<compile_context>
chip_gen: v5e
topology: v5e:2x2
jax: 0.10.0
libtpu: 0.0.40
codegen_flags: <defaults>
</compile_context>

<pallas_src>
import functools

import jax
import jax.numpy as jnp
from jax.experimental import pallas as pl
from jax.experimental.pallas import tpu as pltpu


# ----------------------------------------------------------------------------
# Fused kernel: `block_b` batch elements per grid step, lane-dense (rows, N*C).
# ----------------------------------------------------------------------------
def _st_block_kernel(x_ref, w1_ref, b1_ref, ws_ref, bs_ref, w2_ref, b2_ref,
                     g_ref, bt_ref, o_ref, *, kt, t1, t2, nc1, nc2):
    # x_ref  : (Bb, T,  N*c0)     lane-dense input block
    # w1_ref : (kt*N*c0, 2*N*c1)  tconv1: im2col-stacked, node-block-diagonal,
    #                             GLU halves contiguous, align-1 residual folded in
    # b1_ref : (1, 2*N*c1)
    # ws_ref : (N*c1, N*c1)       combined Chebyshev (Lk x theta) + I residual
    # bs_ref : (1, N*c1)
    # w2_ref : (kt*N*c1, K2p)     tconv2: im2col-stacked, 1x1-align residual folded,
    #                             output lanes zero-padded to K2p (multiple of 128)
    # b2_ref : (1, K2p)           conv2 bias + align bias (padded)
    # g_ref  : (1, K2p)           LayerNorm gamma, flattened (N, c2), padded
    # bt_ref : (1, K2p)           LayerNorm beta, padded
    # o_ref  : (Bb, T2, K2p)
    f32 = jnp.float32
    bb = x_ref.shape[0]
    mxu_dt = w1_ref.dtype            # matmul-operand dtype (f32 or bf16)

    def im2col(h, t_out):
        # Stack the kt shifted time-windows along lanes -> ONE matmul with
        # K = kt * lanes(h).  Returns (bb*t_out, kt*lanes) rows.
        if bb == 1:                  # pure-2D fast path (what small B exercises)
            return jnp.concatenate([h[dt:dt + t_out] for dt in range(kt)], axis=-1)
        hc = jnp.concatenate([h[:, dt:dt + t_out, :] for dt in range(kt)], axis=-1)
        return hc.reshape(bb * t_out, kt * h.shape[-1])

    x = x_ref[0].astype(f32) if bb == 1 else x_ref[...].astype(f32)

    # ---- temporal conv 1 (GLU); align-1 residual folded into the value half --
    xc = im2col(x, t1)                                          # (bb*T1, kt*N*c0)
    z1 = jnp.dot(xc.astype(mxu_dt), w1_ref[...],
                 preferred_element_type=f32) + b1_ref[...].astype(f32)
    h1 = z1[:, :nc1] * jax.nn.sigmoid(z1[:, nc1:])              # (bb*T1, N*c1)

    # ---- spatial Chebyshev conv; "+x" identity residual folded into ws -------
    hs = jnp.dot(h1.astype(mxu_dt), ws_ref[...], preferred_element_type=f32)
    hs = jnp.maximum(hs + bs_ref[...].astype(f32), 0.0)         # (bb*T1, N*c1)

    # ---- temporal conv 2 (relu); 1x1-align residual folded into w2/b2 --------
    hs3 = hs if bb == 1 else hs.reshape(bb, t1, nc1)
    hc = im2col(hs3, t2)                                        # (bb*T2, kt*N*c1)
    z2 = jnp.dot(hc.astype(mxu_dt), w2_ref[...],
                 preferred_element_type=f32) + b2_ref[...].astype(f32)
    h2 = jnp.maximum(z2, 0.0)                                   # (bb*T2, K2p)

    # ---- LayerNorm over the nc2 real lanes (padded lanes are exactly 0) ------
    k2p = h2.shape[-1]
    inv = 1.0 / nc2
    mean = jnp.sum(h2, axis=-1, keepdims=True) * inv
    d = h2 - mean
    if k2p != nc2:                   # zero the pad columns before the variance
        col = jax.lax.broadcasted_iota(jnp.int32, (1, k2p), 1)
        d = jnp.where(col < nc2, d, 0.0)
    var = jnp.sum(d * d, axis=-1, keepdims=True) * inv
    out = (d * jax.lax.rsqrt(var + 1e-5) * g_ref[...].astype(f32)
           + bt_ref[...].astype(f32))

    if bb == 1:
        o_ref[0] = out.astype(o_ref.dtype)
    else:
        o_ref[...] = out.reshape(bb, t2, k2p).astype(o_ref.dtype)


# ----------------------------------------------------------------------------
# One-time weight folding (hoisted OUT of the per-step forward).
# ----------------------------------------------------------------------------
def _align_matrix(n, c_in, c_out, w_align=None, b_align=None):
    """align(c_in -> c_out) as a (n*c_in, n*c_out) matrix + (1, n*c_out) bias."""
    f32 = jnp.float32
    eye_n = jnp.eye(n, dtype=f32)
    if c_in > c_out:
        assert w_align is not None, "c_in > c_out: the module uses a 1x1 align conv"
        a = jnp.kron(eye_n, jnp.transpose(w_align[:, :, 0, 0], (1, 0)))
        b = jnp.tile(b_align.reshape(1, c_out), (n, 1)).reshape(1, n * c_out)
    else:  # zero-pad (c_in < c_out) or identity (c_in == c_out), no bias
        a = jnp.kron(eye_n, jnp.eye(c_in, c_out, dtype=f32))
        b = jnp.zeros((1, n * c_out), f32)
    return a, b


def prepare_st_block_weights(*, kt, n, tconv1, sconv, tconv2, ln,
                             mxu_dtype=jnp.float32):
    """Fold all block parameters into the lane-dense matrices the kernel reads.

    Call ONCE at init (not every forward): the kron / einsum folding is O(N^2).
    NOTE: the block-diagonal (kron I_N) weights and the (N*c1)^2 combined
    Chebyshev matrix are only appropriate for small graphs; for large N the
    sconv should instead be tiled over the node axis with an extra grid dim.
    """
    w1, b1, *a1 = tconv1                 # Conv2d(c0, 2*c1, (kt,1)) [+ optional 1x1 align]
    Lk, theta, b_s = sconv               # (ks,N,N), (c1,c1,ks), (1,c1,1,1)
    w2, b2, *a2 = tconv2                 # Conv2d(c1, c2, (kt,1)) [+ optional 1x1 align]
    gamma, beta = ln                     # LayerNorm([N, c2]) affine

    f32 = jnp.float32
    c0 = w1.shape[1]
    c1 = w1.shape[0] // 2
    c2 = w2.shape[0]
    K0, K1, K2 = n * c0, n * c1, n * c2
    K2p = ((K2 + 127) // 128) * 128      # pad output lanes to a multiple of 128
    eye_n = jnp.eye(n, dtype=f32)

    # --- tconv1 (GLU): im2col-stacked, node-block-diagonal; fold align-1 residual
    ws1 = jnp.transpose(w1[:, :, :, 0], (2, 1, 0)).reshape(kt, c0, 2, c1)      # [dt,i,p,o]
    w1_big = jnp.einsum('dipo,nm->dnipmo', ws1, eye_n).reshape(kt, K0, 2 * K1)
    a1_big, ab1_big = _align_matrix(n, c0, c1, *a1)
    w1_big = w1_big.at[kt - 1, :, :K1].add(a1_big)       # residual uses tap kt-1
    w1_big = w1_big.reshape(kt * K0, 2 * K1)
    b1_big = jnp.tile(b1.reshape(2, 1, c1), (1, n, 1)).reshape(1, 2 * K1)
    b1_big = b1_big.at[:, :K1].add(ab1_big)

    # --- sconv: combined (Lk x theta) matrix; fold the "+x" identity residual
    ws_big = (jnp.einsum('knm,iok->mino', Lk, theta).reshape(K1, K1)
              + jnp.eye(K1, dtype=f32))
    bs_big = jnp.tile(b_s.reshape(1, c1), (n, 1)).reshape(1, K1)

    # --- tconv2 (relu): im2col-stacked block-diag; fold the 1x1-align residual
    ws2 = jnp.transpose(w2[:, :, :, 0], (2, 1, 0))                              # (kt, c1, c2)
    w2_big = jnp.einsum('dio,nm->dnimo', ws2, eye_n).reshape(kt, K1, K2)
    a2_big, ab2_big = _align_matrix(n, c1, c2, *a2)
    w2_big = w2_big.at[kt - 1].add(a2_big)
    w2_big = w2_big.reshape(kt * K1, K2)
    b2_big = jnp.tile(b2.reshape(1, c2), (n, 1)).reshape(1, K2) + ab2_big

    # --- pad output lanes K2 -> K2p with zeros (lane-dense unmasked stores) ----
    pad = K2p - K2
    w2_big = jnp.pad(w2_big, ((0, 0), (0, pad)))
    b2_big = jnp.pad(b2_big, ((0, 0), (0, pad)))
    g_big = jnp.pad(gamma.reshape(1, K2).astype(f32), ((0, 0), (0, pad)))
    bt_big = jnp.pad(beta.reshape(1, K2).astype(f32), ((0, 0), (0, pad)))

    # Only the matmul operands go to the MXU dtype; biases / affine stay f32.
    return dict(w1=w1_big.astype(mxu_dtype), b1=b1_big,
                ws=ws_big.astype(mxu_dtype), bs=bs_big,
                w2=w2_big.astype(mxu_dtype), b2=b2_big,
                gamma=g_big, beta=bt_big)


# ----------------------------------------------------------------------------
# Forward: single pallas_call over a batch-tiled grid.
# ----------------------------------------------------------------------------
@functools.partial(jax.jit, static_argnames=("kt", "c2", "block_b"))
def st_conv_block_forward(x_nchw, weights, *, kt, c2, block_b=None):
    w1, b1, ws, bs, w2, b2, g, bt = (
        weights[k] for k in ("w1", "b1", "ws", "bs", "w2", "b2", "gamma", "beta"))
    B, c0, T, N = x_nchw.shape
    K0 = N * c0
    K1 = ws.shape[0]
    K2p = w2.shape[1]
    K2 = N * c2
    T1 = T - kt + 1
    T2 = T1 - kt + 1

    # Batch tiling: block_b elements per grid step raises matmul M to
    # block_b*T1 rows and amortizes per-step overhead, while keeping the
    # "parallel" grid length >= 2 so both v7x TensorCores are used.
    if block_b is None:
        block_b = max(1, min(8, B // 2)) if B >= 2 else 1
    Bp = -(-B // block_b) * block_b
    grid = (Bp // block_b,)

    # lane-dense channels-last input: (B, T, N*c0)
    x = jnp.transpose(x_nchw, (0, 2, 3, 1)).reshape(B, T, K0)
    if Bp != B:
        x = jnp.pad(x, ((0, Bp - B), (0, 0), (0, 0)))

    out = pl.pallas_call(
        functools.partial(_st_block_kernel, kt=kt, t1=T1, t2=T2, nc1=K1, nc2=K2),
        out_shape=jax.ShapeDtypeStruct((Bp, T2, K2p), x_nchw.dtype),
        grid=grid,
        in_specs=[
            pl.BlockSpec((block_b, T, K0), lambda b: (b, 0, 0)),
            pl.BlockSpec((kt * K0, 2 * K1), lambda b: (0, 0)),
            pl.BlockSpec((1, 2 * K1), lambda b: (0, 0)),
            pl.BlockSpec((K1, K1), lambda b: (0, 0)),
            pl.BlockSpec((1, K1), lambda b: (0, 0)),
            pl.BlockSpec((kt * K1, K2p), lambda b: (0, 0)),
            pl.BlockSpec((1, K2p), lambda b: (0, 0)),
            pl.BlockSpec((1, K2p), lambda b: (0, 0)),
            pl.BlockSpec((1, K2p), lambda b: (0, 0)),
        ],
        out_specs=pl.BlockSpec((block_b, T2, K2p), lambda b: (b, 0, 0)),
        compiler_params=pltpu.CompilerParams(
            dimension_semantics=("parallel",),
            # Explicit scoped-VMEM budget; sized so larger block_b / shapes still
            # fit v7x's 64 MiB VMEM (weights + double-buffered blocks are small).
            vmem_limit_bytes=32 * 1024 * 1024,
        ),
    )(x, w1, b1, ws, bs, w2, b2, g, bt)

    # drop batch / lane padding, back to NCHW (B, c2, T2, N)
    out = out[:B, :, :K2]
    return jnp.transpose(out.reshape(B, T2, N, c2), (0, 3, 1, 2))


# ----------------------------------------------------------------------------
# Pure-JAX reference (mirrors the PyTorch module) for the correctness check.
# ----------------------------------------------------------------------------
def _reference_forward(x, *, kt, w1, b1, Lk, theta, b_s, w2, b2,
                       w_align, b_align, gamma, beta):
    c1 = w1.shape[0] // 2
    c2 = w2.shape[0]

    def tconv(x, w, b, c_out, act, aw=None, ab=None):
        c_in = x.shape[1]
        t_out = x.shape[2] - kt + 1
        conv = sum(jnp.einsum('wi,bitn->bwtn', w[:, :, dt, 0],
                              x[:, :, dt:dt + t_out, :]) for dt in range(kt))
        conv = conv + b[None, :, None, None]
        if aw is not None:
            x_in = jnp.einsum('oi,bitn->botn', aw[:, :, 0, 0], x) + ab[None, :, None, None]
        elif c_in < c_out:
            x_in = jnp.pad(x, ((0, 0), (0, c_out - c_in), (0, 0), (0, 0)))
        else:
            x_in = x
        x_in = x_in[:, :, kt - 1:, :]
        if act == 'GLU':
            return (conv[:, :c_out] + x_in) * jax.nn.sigmoid(conv[:, c_out:])
        return jnp.maximum(conv + x_in, 0.0)

    x_t1 = tconv(x, w1, b1, c1, 'GLU')
    x_c = jnp.einsum('knm,bitm->bitkn', Lk, x_t1)
    x_gc = jnp.einsum('iok,bitkn->botn', theta, x_c) + b_s
    x_s = jnp.maximum(x_gc + x_t1, 0.0)
    x_t2 = tconv(x_s, w2, b2, c2, 'relu', w_align, b_align)
    y = jnp.transpose(x_t2, (0, 2, 3, 1))
    mean = jnp.mean(y, axis=(2, 3), keepdims=True)
    var = jnp.mean((y - mean) ** 2, axis=(2, 3), keepdims=True)
    y = (y - mean) * jax.lax.rsqrt(var + 1e-5) * gamma + beta
    return jnp.transpose(y, (0, 3, 1, 2))


# ----------------------------------------------------------------------------
# Main
# ----------------------------------------------------------------------------
if __name__ == "__main__":
    key = jax.random.PRNGKey(0)
    B, n, T = 2, 16, 12
    kt, ks = 3, 3
    c = (4, 8, 6)                        # (c_in, c_hidden, c_out)
    keys = jax.random.split(key, 12)

    # input (PyTorch NCHW: B, C, T, N)
    x_nchw = jax.random.normal(keys[0], (B, c[0], T, n), jnp.float32)
    Lk = jax.random.normal(keys[1], (ks, n, n), jnp.float32) * 0.2

    # tconv1 (GLU): Conv2d(c0, 2*c1, (kt,1)); align = channel zero-pad (no params)
    w1 = jax.random.normal(keys[2], (2 * c[1], c[0], kt, 1), jnp.float32) * 0.1
    b1 = jax.random.normal(keys[3], (2 * c[1],), jnp.float32) * 0.1

    # sconv: theta (c1, c1, ks), b (1, c1, 1, 1)
    theta = jax.random.normal(keys[4], (c[1], c[1], ks), jnp.float32) * 0.1
    b_s = jax.random.normal(keys[5], (1, c[1], 1, 1), jnp.float32) * 0.1

    # tconv2 (relu): Conv2d(c1, c2, (kt,1)); align = 1x1 conv (c1 > c2)
    w2 = jax.random.normal(keys[6], (c[2], c[1], kt, 1), jnp.float32) * 0.1
    b2 = jax.random.normal(keys[7], (c[2],), jnp.float32) * 0.1
    w_align = jax.random.normal(keys[8], (c[2], c[1], 1, 1), jnp.float32) * 0.1
    b_align = jax.random.normal(keys[9], (c[2],), jnp.float32) * 0.1

    # LayerNorm([n, c2]) affine
    gamma = 1.0 + 0.1 * jax.random.normal(keys[10], (n, c[2]), jnp.float32)
    beta = 0.1 * jax.random.normal(keys[11], (n, c[2]), jnp.float32)

    ref = _reference_forward(x_nchw, kt=kt, w1=w1, b1=b1, Lk=Lk, theta=theta,
                             b_s=b_s, w2=w2, b2=b2, w_align=w_align,
                             b_align=b_align, gamma=gamma, beta=beta)

    # ---- f32 MXU path: strict correctness check -----------------------------
    folded_f32 = prepare_st_block_weights(
        kt=kt, n=n, tconv1=(w1, b1), sconv=(Lk, theta, b_s),
        tconv2=(w2, b2, w_align, b_align), ln=(gamma, beta),
        mxu_dtype=jnp.float32)
    out = jax.block_until_ready(
        st_conv_block_forward(x_nchw, folded_f32, kt=kt, c2=c[2]))
    assert out.shape == (B, c[2], T - 2 * (kt - 1), n), out.shape
    assert bool(jnp.all(jnp.isfinite(out)))
    err = float(jnp.max(jnp.abs(out - ref)))
    assert err < 2e-3, f"f32 max abs err vs reference: {err}"

    # ---- bf16-weights MXU path (per perf review, v5e/v6e): sanity bound ------
    folded_bf16 = prepare_st_block_weights(
        kt=kt, n=n, tconv1=(w1, b1), sconv=(Lk, theta, b_s),
        tconv2=(w2, b2, w_align, b_align), ln=(gamma, beta),
        mxu_dtype=jnp.bfloat16)
    out_bf16 = jax.block_until_ready(
        st_conv_block_forward(x_nchw, folded_bf16, kt=kt, c2=c[2]))
    assert bool(jnp.all(jnp.isfinite(out_bf16)))
    err_bf16 = float(jnp.max(jnp.abs(out_bf16 - ref)))
    assert err_bf16 < 0.25, f"bf16 max abs err vs reference: {err_bf16}"

    print("KERNEL_OK")
</pallas_src>

<mosaic_0001>
module attributes {stable_mosaic.version = 11 : i64} {
  func.func @_st_block_kernel(%arg0: i32, %arg1: memref<1x12x64xf32, #tpu.memory_space<vmem>>, %arg2: memref<192x256xf32, #tpu.memory_space<vmem>>, %arg3: memref<1x256xf32, #tpu.memory_space<vmem>>, %arg4: memref<128x128xf32, #tpu.memory_space<vmem>>, %arg5: memref<1x128xf32, #tpu.memory_space<vmem>>, %arg6: memref<384x128xf32, #tpu.memory_space<vmem>>, %arg7: memref<1x128xf32, #tpu.memory_space<vmem>>, %arg8: memref<1x128xf32, #tpu.memory_space<vmem>>, %arg9: memref<1x128xf32, #tpu.memory_space<vmem>>, %arg10: memref<1x8x128xf32, #tpu.memory_space<vmem>>) attributes {dimension_semantics = [#tpu.dimension_semantics<parallel>], iteration_bounds = array<i64: 2>, scalar_prefetch = 0 : i64, scratch_operands = 0 : i64, tpu.core_type = #tpu.core_type<tc>, window_params = [{transform_indices = @transform_0, window_bounds = array<i64: 1, 12, 64>}, {pipeline_mode = #tpu.pipeline_mode<synchronous>, transform_indices = @transform_1, window_bounds = array<i64: 192, 256>}, {pipeline_mode = #tpu.pipeline_mode<synchronous>, transform_indices = @transform_2, window_bounds = array<i64: 1, 256>}, {pipeline_mode = #tpu.pipeline_mode<synchronous>, transform_indices = @transform_3, window_bounds = array<i64: 128, 128>}, {pipeline_mode = #tpu.pipeline_mode<synchronous>, transform_indices = @transform_4, window_bounds = array<i64: 1, 128>}, {pipeline_mode = #tpu.pipeline_mode<synchronous>, transform_indices = @transform_5, window_bounds = array<i64: 384, 128>}, {pipeline_mode = #tpu.pipeline_mode<synchronous>, transform_indices = @transform_6, window_bounds = array<i64: 1, 128>}, {pipeline_mode = #tpu.pipeline_mode<synchronous>, transform_indices = @transform_7, window_bounds = array<i64: 1, 128>}, {pipeline_mode = #tpu.pipeline_mode<synchronous>, transform_indices = @transform_8, window_bounds = array<i64: 1, 128>}, {transform_indices = @transform_9, window_bounds = array<i64: 1, 8, 128>}]} {
    %c0 = arith.constant 0 : index
    %c0_0 = arith.constant 0 : index
    %c0_1 = arith.constant 0 : index
    %0 = vector.load %arg1[%c0, %c0_0, %c0_1] : memref<1x12x64xf32, #tpu.memory_space<vmem>>, vector<1x12x64xf32>
    %1 = vector.shape_cast %0 : vector<1x12x64xf32> to vector<12x64xf32>
    %2 = vector.extract_strided_slice %1 {offsets = [0, 0], sizes = [10, 64], strides = [1, 1]} : vector<12x64xf32> to vector<10x64xf32>
    %3 = vector.extract_strided_slice %1 {offsets = [1, 0], sizes = [10, 64], strides = [1, 1]} : vector<12x64xf32> to vector<10x64xf32>
    %4 = vector.extract_strided_slice %1 {offsets = [2, 0], sizes = [10, 64], strides = [1, 1]} : vector<12x64xf32> to vector<10x64xf32>
    %5 = tpu.concatenate %2, %3, %4 in 1 : vector<10x64xf32>, vector<10x64xf32>, vector<10x64xf32> -> vector<10x192xf32>
    %c0_2 = arith.constant 0 : index
    %c0_3 = arith.constant 0 : index
    %6 = vector.load %arg2[%c0_2, %c0_3] : memref<192x256xf32, #tpu.memory_space<vmem>>, vector<192x256xf32>
    %cst = arith.constant dense<0.000000e+00> : vector<10x256xf32>
    %7 = tpu.matmul %5, %6, %cst {dimension_numbers = #tpu.dot_dimension_numbers<[1], [0], [0], [1], [0, 0, 1, 1], [], []>} : vector<10x192xf32>, vector<192x256xf32>, vector<10x256xf32> -> vector<10x256xf32>
    %c0_4 = arith.constant 0 : index
    %c0_5 = arith.constant 0 : index
    %8 = vector.load %arg3[%c0_4, %c0_5] : memref<1x256xf32, #tpu.memory_space<vmem>>, vector<1x256xf32>
    %9 = vector.broadcast %8 : vector<1x256xf32> to vector<10x256xf32>
    %10 = arith.addf %7, %9 : vector<10x256xf32>
    %11 = vector.extract_strided_slice %10 {offsets = [0, 0], sizes = [10, 128], strides = [1, 1]} : vector<10x256xf32> to vector<10x128xf32>
    %12 = vector.extract_strided_slice %10 {offsets = [0, 128], sizes = [10, 128], strides = [1, 1]} : vector<10x256xf32> to vector<10x128xf32>
    %13 = arith.negf %12 : vector<10x128xf32>
    %14 = math.exp %13 : vector<10x128xf32>
    %cst_6 = arith.constant 1.000000e+00 : f32
    %15 = vector.broadcast %cst_6 : f32 to vector<10x128xf32>
    %16 = arith.addf %15, %14 : vector<10x128xf32>
    %17 = arith.divf %15, %16 : vector<10x128xf32>
    %18 = arith.mulf %11, %17 : vector<10x128xf32>
    %c0_7 = arith.constant 0 : index
    %c0_8 = arith.constant 0 : index
    %19 = vector.load %arg4[%c0_7, %c0_8] : memref<128x128xf32, #tpu.memory_space<vmem>>, vector<128x128xf32>
    %cst_9 = arith.constant dense<0.000000e+00> : vector<10x128xf32>
    %20 = tpu.matmul %18, %19, %cst_9 {dimension_numbers = #tpu.dot_dimension_numbers<[1], [0], [0], [1], [0, 0, 1, 1], [], []>} : vector<10x128xf32>, vector<128x128xf32>, vector<10x128xf32> -> vector<10x128xf32>
    %c0_10 = arith.constant 0 : index
    %c0_11 = arith.constant 0 : index
    %21 = vector.load %arg5[%c0_10, %c0_11] : memref<1x128xf32, #tpu.memory_space<vmem>>, vector<1x128xf32>
    %22 = vector.broadcast %21 : vector<1x128xf32> to vector<10x128xf32>
    %23 = arith.addf %20, %22 : vector<10x128xf32>
    %cst_12 = arith.constant 0.000000e+00 : f32
    %24 = vector.broadcast %cst_12 : f32 to vector<10x128xf32>
    %25 = arith.maximumf %23, %24 : vector<10x128xf32>
    %26 = vector.extract_strided_slice %25 {offsets = [0, 0], sizes = [8, 128], strides = [1, 1]} : vector<10x128xf32> to vector<8x128xf32>
    %27 = vector.extract_strided_slice %25 {offsets = [1, 0], sizes = [8, 128], strides = [1, 1]} : vector<10x128xf32> to vector<8x128xf32>
    %28 = vector.extract_strided_slice %25 {offsets = [2, 0], sizes = [8, 128], strides = [1, 1]} : vector<10x128xf32> to vector<8x128xf32>
    %29 = tpu.concatenate %26, %27, %28 in 1 : vector<8x128xf32>, vector<8x128xf32>, vector<8x128xf32> -> vector<8x384xf32>
    %c0_13 = arith.constant 0 : index
    %c0_14 = arith.constant 0 : index
    %30 = vector.load %arg6[%c0_13, %c0_14] : memref<384x128xf32, #tpu.memory_space<vmem>>, vector<384x128xf32>
    %cst_15 = arith.constant dense<0.000000e+00> : vector<8x128xf32>
    %31 = tpu.matmul %29, %30, %cst_15 {dimension_numbers = #tpu.dot_dimension_numbers<[1], [0], [0], [1], [0, 0, 1, 1], [], []>} : vector<8x384xf32>, vector<384x128xf32>, vector<8x128xf32> -> vector<8x128xf32>
    %c0_16 = arith.constant 0 : index
    %c0_17 = arith.constant 0 : index
    %32 = vector.load %arg7[%c0_16, %c0_17] : memref<1x128xf32, #tpu.memory_space<vmem>>, vector<1x128xf32>
    %33 = vector.broadcast %32 : vector<1x128xf32> to vector<8x128xf32>
    %34 = arith.addf %31, %33 : vector<8x128xf32>
    %cst_18 = arith.constant 0.000000e+00 : f32
    %35 = vector.broadcast %cst_18 : f32 to vector<8x128xf32>
    %36 = arith.maximumf %34, %35 : vector<8x128xf32>
    %cst_19 = arith.constant dense<0.000000e+00> : vector<8xf32>
    %37 = vector.multi_reduction <add>, %36, %cst_19 [1] : vector<8x128xf32> to vector<8xf32>
    %38 = vector.shape_cast %37 : vector<8xf32> to vector<8x1xf32>
    %cst_20 = arith.constant 0.010416667 : f32
    %39 = vector.broadcast %cst_20 : f32 to vector<8x1xf32>
    %40 = arith.mulf %38, %39 : vector<8x1xf32>
    %41 = vector.broadcast %40 : vector<8x1xf32> to vector<8x128xf32>
    %42 = arith.subf %36, %41 : vector<8x128xf32>
    %43 = tpu.iota {dimensions = array<i32: 1>} : vector<1x128xi32>
    %c96_i32 = arith.constant 96 : i32
    %44 = vector.broadcast %c96_i32 : i32 to vector<1x128xi32>
    %45 = arith.cmpi slt, %43, %44 : vector<1x128xi32>
    %cst_21 = arith.constant 0.000000e+00 : f32
    %46 = vector.shape_cast %45 : vector<1x128xi1> to vector<1x128xi1>
    %47 = vector.broadcast %46 : vector<1x128xi1> to vector<8x128xi1>
    %48 = vector.broadcast %cst_21 : f32 to vector<8x128xf32>
    %49 = arith.select %47, %42, %48 : vector<8x128xi1>, vector<8x128xf32>
    %50 = arith.mulf %49, %49 : vector<8x128xf32>
    %cst_22 = arith.constant dense<0.000000e+00> : vector<8xf32>
    %51 = vector.multi_reduction <add>, %50, %cst_22 [1] : vector<8x128xf32> to vector<8xf32>
    %52 = vector.shape_cast %51 : vector<8xf32> to vector<8x1xf32>
    %cst_23 = arith.constant 0.010416667 : f32
    %53 = vector.broadcast %cst_23 : f32 to vector<8x1xf32>
    %54 = arith.mulf %52, %53 : vector<8x1xf32>
    %cst_24 = arith.constant 9.99999974E-6 : f32
    %55 = vector.broadcast %cst_24 : f32 to vector<8x1xf32>
    %56 = arith.addf %54, %55 : vector<8x1xf32>
    %57 = math.rsqrt %56 : vector<8x1xf32>
    %58 = vector.broadcast %57 : vector<8x1xf32> to vector<8x128xf32>
    %59 = arith.mulf %49, %58 : vector<8x128xf32>
    %c0_25 = arith.constant 0 : index
    %c0_26 = arith.constant 0 : index
    %60 = vector.load %arg8[%c0_25, %c0_26] : memref<1x128xf32, #tpu.memory_space<vmem>>, vector<1x128xf32>
    %61 = vector.broadcast %60 : vector<1x128xf32> to vector<8x128xf32>
    %62 = arith.mulf %59, %61 : vector<8x128xf32>
    %c0_27 = arith.constant 0 : index
    %c0_28 = arith.constant 0 : index
    %63 = vector.load %arg9[%c0_27, %c0_28] : memref<1x128xf32, #tpu.memory_space<vmem>>, vector<1x128xf32>
    %64 = vector.broadcast %63 : vector<1x128xf32> to vector<8x128xf32>
    %65 = arith.addf %62, %64 : vector<8x128xf32>
    %c0_29 = arith.constant 0 : index
    %c0_30 = arith.constant 0 : index
    %c0_31 = arith.constant 0 : index
    %66 = vector.load %arg10[%c0_29, %c0_30, %c0_31] : memref<1x8x128xf32, #tpu.memory_space<vmem>>, vector<1x8x128xf32>
    %67 = vector.shape_cast %66 : vector<1x8x128xf32> to vector<8x128xf32>
    %68 = vector.shape_cast %65 : vector<8x128xf32> to vector<1x8x128xf32>
    tpu.vector_store %arg10[%c0_29, %c0_30, %c0_31], %68 {strides = array<i32>} : memref<1x8x128xf32, #tpu.memory_space<vmem>>, vector<1x8x128xf32>,
    return
  }
  func.func @transform_0(%arg0: i32) -> (i32, i32, i32) {
    %c0_i32 = arith.constant 0 : i32
    %c0_i32_0 = arith.constant 0 : i32
    %c0_i32_1 = arith.constant 0 : i32
    return %arg0, %c0_i32, %c0_i32_0 : i32, i32, i32
  }
  func.func @transform_1(%arg0: i32) -> (i32, i32) {
    %c0_i32 = arith.constant 0 : i32
    %c0_i32_0 = arith.constant 0 : i32
    %c0_i32_1 = arith.constant 0 : i32
    return %c0_i32, %c0_i32_0 : i32, i32
  }
  func.func @transform_2(%arg0: i32) -> (i32, i32) {
    %c0_i32 = arith.constant 0 : i32
    %c0_i32_0 = arith.constant 0 : i32
    %c0_i32_1 = arith.constant 0 : i32
    return %c0_i32, %c0_i32_0 : i32, i32
  }
  func.func @transform_3(%arg0: i32) -> (i32, i32) {
    %c0_i32 = arith.constant 0 : i32
    %c0_i32_0 = arith.constant 0 : i32
    %c0_i32_1 = arith.constant 0 : i32
    return %c0_i32, %c0_i32_0 : i32, i32
  }
  func.func @transform_4(%arg0: i32) -> (i32, i32) {
    %c0_i32 = arith.constant 0 : i32
    %c0_i32_0 = arith.constant 0 : i32
    %c0_i32_1 = arith.constant 0 : i32
    return %c0_i32, %c0_i32_0 : i32, i32
  }
  func.func @transform_5(%arg0: i32) -> (i32, i32) {
    %c0_i32 = arith.constant 0 : i32
    %c0_i32_0 = arith.constant 0 : i32
    %c0_i32_1 = arith.constant 0 : i32
    return %c0_i32, %c0_i32_0 : i32, i32
  }
  func.func @transform_6(%arg0: i32) -> (i32, i32) {
    %c0_i32 = arith.constant 0 : i32
    %c0_i32_0 = arith.constant 0 : i32
    %c0_i32_1 = arith.constant 0 : i32
    return %c0_i32, %c0_i32_0 : i32, i32
  }
  func.func @transform_7(%arg0: i32) -> (i32, i32) {
    %c0_i32 = arith.constant 0 : i32
    %c0_i32_0 = arith.constant 0 : i32
    %c0_i32_1 = arith.constant 0 : i32
    return %c0_i32, %c0_i32_0 : i32, i32
  }
  func.func @transform_8(%arg0: i32) -> (i32, i32) {
    %c0_i32 = arith.constant 0 : i32
    %c0_i32_0 = arith.constant 0 : i32
    %c0_i32_1 = arith.constant 0 : i32
    return %c0_i32, %c0_i32_0 : i32, i32
  }
  func.func @transform_9(%arg0: i32) -> (i32, i32, i32) {
    %c0_i32 = arith.constant 0 : i32
    %c0_i32_0 = arith.constant 0 : i32
    %c0_i32_1 = arith.constant 0 : i32
    return %arg0, %c0_i32, %c0_i32_0 : i32, i32, i32
  }
}

</mosaic_0001>

<bundles_post_ra>
// kernel: st_conv_block_forward.1
= control target key start
LH: loop header
LB: loop body
LE: loop exit
PB: predicated region body
PF: predicated region fallthrough
CT: control target
= control target key end

     0   :  { %14 = vsyncpa [#allocation3], 0  ;;  %s1285_s0 = inlined_call_operand.vmem [shape: f32[2,12,64], index: 0, kind: input, shape index: {}]   ;;  %s1286_s1 = inlined_call_operand.vmem [shape: f32[192,256], index: 1, kind: input, shape index: {}]   ;;  %s1287_s2 = inlined_call_operand.vmem [shape: f32[1,256], index: 2, kind: input, shape index: {}]   ;;  %s1288_s3 = inlined_call_operand.hbm [shape: f32[128,128], index: 3, kind: input, shape index: {}]   ;;  %s1289_s4 = inlined_call_operand.vmem [shape: f32[1,128], index: 4, kind: input, shape index: {}]   ;;  %s1290_s5 = inlined_call_operand.hbm [shape: f32[384,128], index: 5, kind: input, shape index: {}]   ;;  %s1291_s6 = inlined_call_operand.vmem [shape: f32[1,128], index: 6, kind: input, shape index: {}]   ;;  %s1292_s7 = inlined_call_operand.vmem [shape: f32[1,128], index: 7, kind: input, shape index: {}]   ;;  %s1293_s8 = inlined_call_operand.vmem [shape: f32[1,128], index: 8, kind: input, shape index: {}]   ;;  %s1294_s9 = inlined_call_operand.vmem [shape: f32[2,8,128], index: 9, kind: output, shape index: {}]  }
   0x1   :  { %15 = vsyncpa [#allocation5], 0  ;;  %s1054_s30 = smov 0  }
   0x2 LB: > { %s263_s12 = sshll.u32 %s1288_s3, 4  ;;  %s856_s13 = sadd.s32 4294967295, %s997_s30   ;;  %s997_s30 = sphi %s1054_s30, %s21_s30   ;;  %s264_s12 = int_to_ptr.hbm [resolvable:$true] %s263_s12 }
   0x3   : > { %p858_p0 = scmp.ge.s32.totalorder %s997_s30, 1  ;;  %p246_p1 = scmp.lt.s32.totalorder %s997_s30, 3 }
   0x4   : > { %p892_p2 = scmp.eq.s32.totalorder %s856_s13, 0  ;;  %s999_s15 = smov [#allocation2]  }
   0x5   : > { %p1065_p3 = pnand %p858_p0, %p246_p1  ;;  %s265_s16 = sshll.u32 %s999_s15, 4  ;;  %s266_s16 = int_to_ptr.vmem [resolvable:$true] %s265_s16 }
   0x6   : > { %s280_s19 = sshll.u32 %s1290_s5, 4  ;;  %s1000_s20 = smov [#allocation4]   ;;  %s281_s19 = int_to_ptr.hbm [resolvable:$true] %s280_s19 }
   0x7   : > { %p885_p4 = pneg %p1065_p3  ;;  %s282_s21 = sshll.u32 %s1000_s20, 4  ;;  %s283_s21 = int_to_ptr.vmem [resolvable:$true] %s282_s21 }
   0x8   : > { %s1001_s22 = smov 128   ;;  %s1002_s23 = smov 8  }
   0x9   : > { %p886_p5 = pnand %p892_p2, %p885_p4  ;;  %315 = sbr.rel (%p1065_p3) target bundleno = 853 (0x355), region = 56 }
   0xb   : > { %888 = dma.hbm_to_vmem [thread:$0]  (!%p886_p5), %s264_s12, 2048, %s266_s16, [#allocation3], %s1001_s22, %s1001_s22, %s1002_s23  }
   0xc   : > { %891 = dma.hbm_to_vmem [thread:$0]  (!%p886_p5), %s281_s19, 6144, %s283_s21, [#allocation5], %s1001_s22, %s1001_s22, %s1002_s23  }
   0xe   : > { %988 = dma.done.wait (%p892_p2), [#allocation3], 2048  }
   0xf   : > { %990 = vsyncadd (%p892_p2), [#allocation3], 4294965248 }
  0x10   : > { %992 = dma.done.wait (%p892_p2), [#allocation5], 6144  }
  0x11   : > { %994 = vsyncadd (%p892_p2), [#allocation5], 4294961152  ;;  %p356_p6 = scmp.lt.s32.totalorder %s856_s13, 1  ;;  %vm369_vm0 = vcmask 1046528   ;;  %v416_v2 = vld [vmem:[%s1286_s1 + $0xf0] sm:$0xff]  ;;  %v417_v5 = vld [vmem:[%s1286_s1 + $0xf8] sm:$0xff] }
  0x12   : > { %444 = vmatpush.msra.mxu0 %v416_v2  ;;  %v414_v6 = vld [vmem:[%s1286_s1 + $0xe0] sm:$0xff]  ;;  %v415_v7 = vld [vmem:[%s1286_s1 + $0xe8] sm:$0xff]  ;;  %490 = vmatpush.msra.mxu2 %v417_v5  ;;  %v412_v8 = vld [vmem:[%s1286_s1 + $0xd0] sm:$0xff]  ;;  %s1003_s21 = smov 64   ;;  %vm379_vm1 = vcmask 1045504   ;;  %vm383_vm2 = vcmask 523264  }
  0x13   : > { %s1297_s13 = smov (!%p356_p6, %s856_s13), 1  ;;  %v413_v10 = vld [vmem:[%s1286_s1 + $0xd8] sm:$0xff]  ;;  %v410_v11 = vld [vmem:[%s1286_s1 + $0xc0] sm:$0xff]  ;;  %v411_v12 = vld [vmem:[%s1286_s1 + $0xc8] sm:$0xff] }
  0x14   : > { %s876_s24 = sshll.u32 %s1297_s13, 4  ;;  %445 = vmatpush.msra.mxu0 %v414_v6  ;;  %491 = vmatpush.msra.mxu2 %v415_v7  ;;  %v408_v13 = vld [vmem:[%s1286_s1 + $0xb0] sm:$0xff]  ;;  %v409_v14 = vld [vmem:[%s1286_s1 + $0xb8] sm:$0xff]  ;;  %v406_v17 = vld [vmem:[%s1286_s1 + $0xa0] sm:$0xff]  ;;  %s867_s20 = sshll.u32 %s1297_s13, 3 }
  0x15   : > { %s360_s27 = scalar_lea.vmem %s1285_s0, %s876_s24  ;;  %v432_v15 = vld [vmem:[%s1286_s1 + $0x170] sm:$0xff]  ;;  %v433_v16 = vld [vmem:[%s1286_s1 + $0x178] sm:$0xff]  ;;  %v430_v18 = vld [vmem:[%s1286_s1 + $0x160] sm:$0xff]  ;;  %s364_s25 = scalar_lea.vmem %s1294_s9, %s867_s20 }
  0x16   : > { %v1087_v0 = vld [vmem:[%s360_s27] sm:$0xff]  ;;  %v1089_v1 = vld [vmem:[%s360_s27 + $0x8] sm:$0xf]  ;;  %446 = vmatpush.msra.mxu0 %v412_v8  ;;  %492 = vmatpush.msra.mxu2 %v413_v10  ;;  %v404_v21 = vld [vmem:[%s1286_s1 + $0x90] sm:$0xff] }
  0x17   : > { %v370_v3 = vrot.slane %v1087_v0, 1  ;;  %v371_v4 = vrot.slane %v1089_v1, 1  ;;  %475 = vmatpush.msra.mxu1 %v432_v15  ;;  %v407_v19 = vld [vmem:[%s1286_s1 + $0xa8] sm:$0xff]  ;;  %521 = vmatpush.msra.mxu3 %v433_v16  ;;  %v428_v22 = vld [vmem:[%s1286_s1 + $0x150] sm:$0xff]  ;;  %v405_v23 = vld [vmem:[%s1286_s1 + $0x98] sm:$0xff]  ;;  %v380_v51 = vrot.slane %v1087_v0, 2 }
  0x18   : > { %447 = vmatpush.msra.mxu0 %v410_v11  ;;  %493 = vmatpush.msra.mxu2 %v411_v12  ;;  %v431_v20 = vld [vmem:[%s1286_s1 + $0x168] sm:$0xff]  ;;  %v429_v24 = vld [vmem:[%s1286_s1 + $0x158] sm:$0xff]  ;;  %v402_v25 = vld [vmem:[%s1286_s1 + $0x80] sm:$0xff]  ;;  %v381_v52 = vrot.slane %v1089_v1, 2 }
  0x19   : > { %v372_v9 = vsel %vm369_vm0, %v370_v3, %v371_v4  ;;  %476 = vmatpush.msra.mxu1 %v430_v18  ;;  %522 = vmatpush.msra.mxu3 %v431_v20  ;;  %v403_v26 = vld [vmem:[%s1286_s1 + $0x88] sm:$0xff]  ;;  %v426_v27 = vld [vmem:[%s1286_s1 + $0x140] sm:$0xff]  ;;  %v400_v28 = vld [vmem:[%s1286_s1 + $0x70] sm:$0xff] }
  0x1a   : > { %373 = vrot.lane.b32.xlu0 %v372_v9, %s1003_s21  ;;  %448 = vmatpush.msra.mxu0 %v408_v13  ;;  %v401_v29 = vld [vmem:[%s1286_s1 + $0x78] sm:$0xff]  ;;  %v427_v30 = vld [vmem:[%s1286_s1 + $0x148] sm:$0xff]  ;;  %v424_v31 = vld [vmem:[%s1286_s1 + $0x130] sm:$0xff]  ;;  %v382_v55 = vsel %vm379_vm1, %v380_v51, %v381_v52 }
  0x1b   : > { %494 = vmatpush.msra.mxu2 %v409_v14  ;;  %477 = vmatpush.msra.mxu1 %v428_v22  ;;  %v425_v32 = vld [vmem:[%s1286_s1 + $0x138] sm:$0xff]  ;;  %v398_v33 = vld [vmem:[%s1286_s1 + $0x60] sm:$0xff]  ;;  %v399_v35 = vld [vmem:[%s1286_s1 + $0x68] sm:$0xff] }
  0x1c   : > { %449 = vmatpush.msra.mxu0 %v406_v17  ;;  %523 = vmatpush.msra.mxu3 %v429_v24  ;;  %v422_v34 = vld [vmem:[%s1286_s1 + $0x120] sm:$0xff]  ;;  %v423_v36 = vld [vmem:[%s1286_s1 + $0x128] sm:$0xff]  ;;  %v396_v37 = vld [vmem:[%s1286_s1 + $0x50] sm:$0xff] }
  0x1d   : > { %495 = vmatpush.msra.mxu2 %v407_v19  ;;  %478 = vmatpush.msra.mxu1 %v426_v27  ;;  %v397_v38 = vld [vmem:[%s1286_s1 + $0x58] sm:$0xff]  ;;  %v394_v39 = vld [vmem:[%s1286_s1 + $0x40] sm:$0xff]  ;;  %v395_v40 = vld [vmem:[%s1286_s1 + $0x48] sm:$0xff] }
  0x1e   : > { %450 = vmatpush.msra.mxu0 %v404_v21  ;;  %524 = vmatpush.msra.mxu3 %v427_v30  ;;  %v392_v41 = vld [vmem:[%s1286_s1 + $0x30] sm:$0xff]  ;;  %v393_v42 = vld [vmem:[%s1286_s1 + $0x38] sm:$0xff]  ;;  %v390_v43 = vld [vmem:[%s1286_s1 + $0x20] sm:$0xff] }
  0x1f   : > { %496 = vmatpush.msra.mxu2 %v405_v23  ;;  %479 = vmatpush.msra.mxu1 %v424_v31  ;;  %v391_v44 = vld [vmem:[%s1286_s1 + $0x28] sm:$0xff]  ;;  %v388_v45 = vld [vmem:[%s1286_s1 + $0x10] sm:$0xff]  ;;  %v389_v46 = vld [vmem:[%s1286_s1 + $0x18] sm:$0xff] }
  0x20   : > { %451 = vmatpush.msra.mxu0 %v402_v25  ;;  %525 = vmatpush.msra.mxu3 %v425_v32  ;;  %v386_v47 = vld [vmem:[%s1286_s1] sm:$0xff]  ;;  %v420_v48 = vld [vmem:[%s1286_s1 + $0x110] sm:$0xff]  ;;  %v387_v49 = vld [vmem:[%s1286_s1 + $0x8] sm:$0xff] }
  0x21   : > { %497 = vmatpush.msra.mxu2 %v403_v26  ;;  %480 = vmatpush.msra.mxu1 %v422_v34  ;;  %v421_v50 = vld [vmem:[%s1286_s1 + $0x118] sm:$0xff]  ;;  %v418_v53 = vld [vmem:[%s1286_s1 + $0x100] sm:$0xff]  ;;  %v419_v54 = vld [vmem:[%s1286_s1 + $0x108] sm:$0xff] }
  0x22   : > { %375 = vrot.lane.b32.xlu0 %v371_v4, %s1003_s21  ;;  %452 = vmatpush.msra.mxu0 %v400_v28  ;;  %v591_v60 = vld [vmem:[#allocation2 + $0x78] sm:$0xff]  ;;  %v590_v61 = vld [vmem:[#allocation2 + $0x70] sm:$0xff]  ;;  %v589_v62 = vld [vmem:[#allocation2 + $0x68] sm:$0xff] }
  0x23   : > { %498 = vmatpush.msra.mxu2 %v401_v29  ;;  %526 = vmatpush.msra.mxu3 %v423_v36  ;;  %v588_v63 = vld [vmem:[#allocation2 + $0x60] sm:$0xff]  ;;  %v587_v2 = vld [vmem:[#allocation2 + $0x58] sm:$0xff]  ;;  %v586_v3 = vld [vmem:[#allocation2 + $0x50] sm:$0xff] }
  0x24   : > { %453 = vmatpush.msra.mxu0 %v398_v33  ;;  %481 = vmatpush.msra.mxu1 %v420_v48  ;;  %v584_v4 = vld [vmem:[#allocation2 + $0x40] sm:$0xff]  ;;  %v583_v5 = vld [vmem:[#allocation2 + $0x38] sm:$0xff]  ;;  %v581_v6 = vld [vmem:[#allocation2 + $0x28] sm:$0xff] }
  0x25   : > { %499 = vmatpush.msra.mxu2 %v399_v35  ;;  %527 = vmatpush.msra.mxu3 %v421_v50  ;;  %v580_v7 = vld [vmem:[#allocation2 + $0x20] sm:$0xff]  ;;  %v579_v8 = vld [vmem:[#allocation2 + $0x18] sm:$0xff]  ;;  %v578_v9 = vld [vmem:[#allocation2 + $0x10] sm:$0xff] }
  0x26   : > { %454 = vmatpush.msra.mxu0 %v396_v37  ;;  %482 = vmatpush.msra.mxu1 %v418_v53  ;;  %v1246_v10 = vld [vmem:[%s1287_s2] sm:$0x3]  ;;  %v577_v12 = vld [vmem:[#allocation2 + $0x8] sm:$0xff]  ;;  %v646_v23 = vld [vmem:[#allocation4 + $0x78] sm:$0xff] }
  0x27   : > { %500 = vmatpush.msra.mxu2 %v397_v38  ;;  %528 = vmatpush.msra.mxu3 %v419_v54  ;;  %v437_v11 = vperm.slane %v1246_v10, 1  ;;  %v576_v14 = vld [vmem:[#allocation2] sm:$0xff]  ;;  %v645_v24 = vld [vmem:[#allocation4 + $0x70] sm:$0xff]  ;;  %v644_v27 = vld [vmem:[#allocation4 + $0x68] sm:$0xff] }
  0x28   : > { %455 = vmatpush.msra.mxu0 %v394_v39  ;;  %868 = vmatmul.msk.f32.vlgmr.msra.gmra.mxu1 %vm383_vm2, %v382_v55  ;;  %v662_v28 = vld [vmem:[#allocation4 + $0xf8] sm:$0xff]  ;;  %v661_v31 = vld [vmem:[#allocation4 + $0xf0] sm:$0xff]  ;;  %v643_v33 = vld [vmem:[#allocation4 + $0x60] sm:$0xff] }
  0x29   : > { %501 = vmatpush.msra.mxu2 %v395_v40  ;;  %870 = vmatmul.msk.f32.vlgmr.msra.gmra.mxu3 %vm383_vm2, %v382_v55  ;;  %v678_v29 = vld [vmem:[#allocation4 + $0x178] sm:$0xff]  ;;  %v677_v32 = vld [vmem:[#allocation4 + $0x170] sm:$0xff]  ;;  %v660_v34 = vld [vmem:[#allocation4 + $0xe8] sm:$0xff] }
  0x2a   : > { %456 = vmatpush.msra.mxu0 %v392_v41  ;;  %596 = vmatpush.msrb.mxu1 %v591_v60  ;;  %v676_v35 = vld [vmem:[#allocation4 + $0x168] sm:$0xff]  ;;  %v642_v36 = vld [vmem:[#allocation4 + $0x58] sm:$0xff]  ;;  %v659_v37 = vld [vmem:[#allocation4 + $0xe0] sm:$0xff] }
  0x2b   : > { %502 = vmatpush.msra.mxu2 %v393_v42  ;;  %683 = vmatpush.msrb.mxu3 %v646_v23  ;;  %v675_v38 = vld [vmem:[#allocation4 + $0x160] sm:$0xff]  ;;  %v641_v39 = vld [vmem:[#allocation4 + $0x50] sm:$0xff]  ;;  %v658_v40 = vld [vmem:[#allocation4 + $0xd8] sm:$0xff] }
  0x2c   : > { %457 = vmatpush.msra.mxu0 %v390_v43  ;;  %597 = vmatpush.msrb.mxu1 %v590_v61  ;;  %v674_v41 = vld [vmem:[#allocation4 + $0x158] sm:$0xff]  ;;  %v640_v43 = vld [vmem:[#allocation4 + $0x48] sm:$0xff]  ;;  %v673_v48 = vld [vmem:[#allocation4 + $0x150] sm:$0xff] }
  0x2d   : > { %503 = vmatpush.msra.mxu2 %v391_v44  ;;  %684 = vmatpush.msrb.mxu3 %v645_v24  ;;  %v657_v44 = vld [vmem:[#allocation4 + $0xd0] sm:$0xff]  ;;  %v639_v51 = vld [vmem:[#allocation4 + $0x40] sm:$0xff]  ;;  %v672_v53 = vld [vmem:[#allocation4 + $0x148] sm:$0xff] }
  0x2e   : > { %458 = vmatpush.msra.mxu0 %v388_v45  ;;  %598 = vmatpush.msrb.mxu1 %v589_v62  ;;  %v638_v55 = vld [vmem:[#allocation4 + $0x38] sm:$0xff]  ;;  %v633_v24 = vld [vmem:[#allocation4 + $0x10] sm:$0xff] }
  0x2f   : > { %504 = vmatpush.msra.mxu2 %v389_v46  ;;  %685 = vmatpush.msrb.mxu3 %v644_v27  ;;  %v632_v27 = vld [vmem:[#allocation4 + $0x8] sm:$0xff] }
  0x30   : > { %459 = vmatpush.msra.mxu0 %v386_v47  ;;  %869 = vmatmul.msk.f32.gmra.mxu1 %vm383_vm2, %v381_v52 }
  0x31   : > { %505 = vmatpush.msra.mxu2 %v387_v49  ;;  %871 = vmatmul.msk.f32.gmra.mxu3 %vm383_vm2, %v381_v52  ;;  %v436_v49 = vperm.slane %v1246_v10, 0  ;;  %v656_v52 = vld [vmem:[#allocation4 + $0xc8] sm:$0xff] }
  0x32   : > { %599 = vmatpush.msrb.mxu1 %v588_v63  ;;  %703 = vmatpush.msrb.mxu0 %v662_v28  ;;  %v637_v63 = vld [vmem:[#allocation4 + $0x30] sm:$0xff] }
  0x33   : > { %723 = vmatpush.msrb.mxu2 %v678_v29  ;;  %686 = vmatpush.msrb.mxu3 %v643_v33  ;;  %v653_v28 = vld [vmem:[#allocation4 + $0xb0] sm:$0xff]  ;;  %v651_v33 = vld [vmem:[#allocation4 + $0xa0] sm:$0xff] }
  0x34   : > { %600 = vmatpush.msrb.mxu1 %v587_v2  ;;  %704 = vmatpush.msrb.mxu0 %v661_v31  ;;  %v669_v29 = vld [vmem:[#allocation4 + $0x130] sm:$0xff]  ;;  %v652_v31 = vld [vmem:[#allocation4 + $0xa8] sm:$0xff] }
  0x35   : > { %724 = vmatpush.msrb.mxu2 %v677_v32  ;;  %687 = vmatpush.msrb.mxu3 %v642_v36  ;;  %v668_v32 = vld [vmem:[#allocation4 + $0x128] sm:$0xff]  ;;  %v666_v36 = vld [vmem:[#allocation4 + $0x118] sm:$0xff] }
  0x36   : > { %601 = vmatpush.msrb.mxu1 %v586_v3  ;;  %705 = vmatpush.msrb.mxu0 %v660_v34  ;;  %v636_v3 = vld [vmem:[#allocation4 + $0x28] sm:$0xff]  ;;  %v667_v34 = vld [vmem:[#allocation4 + $0x120] sm:$0xff] }
  0x37   : > { %725 = vmatpush.msrb.mxu2 %v676_v35  ;;  %688 = vmatpush.msrb.mxu3 %v641_v39  ;;  %v650_v35 = vld [vmem:[#allocation4 + $0x98] sm:$0xff]  ;;  %v648_v39 = vld [vmem:[#allocation4 + $0x88] sm:$0xff] }
  0x38   : > { %706 = vmatpush.msrb.mxu0 %v659_v37  ;;  %v649_v37 = vld [vmem:[#allocation4 + $0x90] sm:$0xff] }
  0x39   : > { %726 = vmatpush.msrb.mxu2 %v675_v38  ;;  %689 = vmatpush.msrb.mxu3 %v640_v43  ;;  %v665_v38 = vld [vmem:[#allocation4 + $0x110] sm:$0xff]  ;;  %v909_v43 = vld [vmem:[%s1289_s4] ss:$0 sm:$0xff] }
  0x3a   : > { %707 = vmatpush.msrb.mxu0 %v658_v40  ;;  %v664_v40 = vld [vmem:[#allocation4 + $0x108] sm:$0xff] }
  0x3b   : > { %727 = vmatpush.msrb.mxu2 %v674_v41  ;;  %690 = vmatpush.msrb.mxu3 %v639_v51  ;;  %v647_v41 = vld [vmem:[#allocation4 + $0x80] sm:$0xff] }
  0x3c   : > { %708 = vmatpush.msrb.mxu0 %v657_v44 }
  0x3d   : > { %728 = vmatpush.msrb.mxu2 %v673_v48  ;;  %691 = vmatpush.msrb.mxu3 %v638_v55 }
  0x3e   : > { %709 = vmatpush.msrb.mxu0 %v656_v52 }
  0x3f   : > { %729 = vmatpush.msrb.mxu2 %v672_v53  ;;  %692 = vmatpush.msrb.mxu3 %v637_v63 }
  0x41   : > { %693 = vmatpush.msrb.mxu3 %v636_v3 }
  0x8c   : > { %v374_v56 = vpop.permute.xlu0 %373 }
  0x8d   : > { %v384_v57 = vsel %vm383_vm2, %v1087_v0, %v374_v56  ;;  %v585_v0 = vld [vmem:[#allocation2 + $0x48] sm:$0xff]  ;;  %v655_v56 = vld [vmem:[#allocation4 + $0xc0] sm:$0xff] }
  0x8e   : > { %460 = vmatmul.f32.vlgmr.msra.gmra.mxu0 %v384_v57  ;;  %506 = vmatmul.f32.vlgmr.msra.gmra.mxu2 %v384_v57 }
  0x8f   : > { %602 = vmatpush.msrb.mxu1 %v585_v0  ;;  %710 = vmatpush.msrb.mxu0 %v655_v56  ;;  %v910_v56 = vld [vmem:[%s1291_s6] ss:$0 sm:$0xff] }
  0x91   : > { %603 = vmatpush.msrb.mxu1 %v584_v4 }
  0x93   : > { %604 = vmatpush.msrb.mxu1 %v583_v5 }
  0x94   : > { %v376_v58 = vpop.permute.xlu0 %375 }
  0x95   : > { %v385_v59 = vsel %vm383_vm2, %v1089_v1, %v376_v58  ;;  %v582_v1 = vld [vmem:[#allocation2 + $0x30] sm:$0xff] }
  0x96   : > { %463 = vmatmul.f32.gmra.mxu0 %v385_v59  ;;  %509 = vmatmul.f32.gmra.mxu2 %v385_v59  ;;  %v671_v59 = vld [vmem:[#allocation4 + $0x140] sm:$0xff] }
  0x97   : > { %605 = vmatpush.msrb.mxu1 %v582_v1  ;;  %730 = vmatpush.msrb.mxu2 %v671_v59 }
  0x99   : > { %606 = vmatpush.msrb.mxu1 %v581_v6 }
  0x9b   : > { %607 = vmatpush.msrb.mxu1 %v580_v7  ;;  %v635_v7 = vld [vmem:[#allocation4 + $0x20] sm:$0xff] }
  0x9c   : > { %694 = vmatpush.msrb.mxu3 %v635_v7 }
  0x9d   : > { %608 = vmatpush.msrb.mxu1 %v579_v8 }
  0x9f   : > { %609 = vmatpush.msrb.mxu1 %v578_v9 }
  0xa1   : > { %610 = vmatpush.msrb.mxu1 %v577_v12  ;;  %v634_v12 = vld [vmem:[#allocation4 + $0x18] sm:$0xff] }
  0xa2   : > { %695 = vmatpush.msrb.mxu3 %v634_v12 }
  0xa3   : > { %611 = vmatpush.msrb.mxu1 %v576_v14 }
  0xa4   : > { %696 = vmatpush.msrb.mxu3 %v633_v24 }
  0xa5   : > { %v484_v57 = vpop.f32.mrf.mxu1 }
  0xa6   : > { %697 = vmatpush.msrb.mxu3 %v632_v27 }
  0xac   : > { %v530_v13 = vpop.f32.mrf.mxu3 }
  0xb4   : > { %v533_v20 = vpop.f32.mrf.mxu3 }
 0x10b   : > { %v461_v46 = vpop.f32.mrf.mxu0 }
 0x10c   : > { %v462_v60 = vadd.f32 %v461_v46, %v436_v49 }
 0x10e   : > { %v485_v5 = vadd.f32 %v484_v57, %v462_v60 }
 0x111   : > { %v507_v15 = vpop.f32.mrf.mxu2 }
 0x112   : > { %v508_v16 = vadd.f32 %v507_v15, %v437_v11 }
 0x113   : > { %v464_v8 = vpop.f32.mrf.mxu0 }
 0x114   : > { %v531_v17 = vadd.f32 %v530_v13, %v508_v16  ;;  %v465_v14 = vadd.f32 %v464_v8, %v436_v49 }
 0x116   : > { %v872_v18 = vmul.f32 -1.442695, %v531_v17  ;;  %v487_v17 = vpop.f32.mrf.mxu1 }
 0x118   : > { %913 = vpow2.f32 %v872_v18 }
 0x119   : > { %v510_v19 = vpop.f32.mrf.mxu2 }
 0x11a   : > { %v511_v21 = vadd.f32 %v510_v19, %v437_v11 }
 0x11c   : > { %v534_v22 = vadd.f32 %v533_v20, %v511_v21  ;;  %v488_v20 = vadd.f32 %v487_v17, %v465_v14 }
 0x11e   : > { %v914_v25 = vpop.eup %913  ;;  %v873_v26 = vmul.f32 -1.442695, %v534_v22 }
 0x11f   : > { %v1249_v30 = vadd.f32 1.0, %v914_v25  ;;  %v654_v25 = vld [vmem:[#allocation4 + $0xb8] sm:$0xff] }
 0x120   : > { %915 = vpow2.f32 %v873_v26  ;;  %v670_v26 = vld [vmem:[#allocation4 + $0x138] sm:$0xff]  ;;  %711 = vmatpush.msrb.mxu0 %v654_v25 }
 0x121   : > { %917 = vrcp.f32 %v1249_v30  ;;  %v555_v58 = vand.u32 2147483648, %v1249_v30  ;;  %v553_v62 = vand.u32 2147483647, %v1249_v30  ;;  %vm549_vm4 = vweird.f32 %v1249_v30  ;;  %731 = vmatpush.msrb.mxu2 %v670_v26 }
 0x122   : > { %712 = vmatpush.msrb.mxu0 %v653_v28 }
 0x123   : > { %v556_v4 = vor.u32 1.1754944e-38, %v555_v58  ;;  %vm554_vm6 = vcmp.eq.f32.partialorder %v553_v62, 8.507059e+37  ;;  %732 = vmatpush.msrb.mxu2 %v669_v29 }
 0x124   : > { %713 = vmatpush.msrb.mxu0 %v652_v31 }
 0x125   : > { %733 = vmatpush.msrb.mxu2 %v668_v32 }
 0x126   : > { %v916_v42 = vpop.eup %915  ;;  %714 = vmatpush.msrb.mxu0 %v651_v33 }
 0x127   : > { %v918_v45 = vpop.eup %917  ;;  %v1252_v47 = vadd.f32 1.0, %v916_v42  ;;  %734 = vmatpush.msrb.mxu2 %v667_v34  ;;  %v663_v42 = vld [vmem:[#allocation4 + $0x100] sm:$0xff] }
 0x128   : > { %v545_v50 = vmul.f32 %v918_v45, %v1249_v30  ;;  %vm550_vm3 = vweird.f32 %v918_v45  ;;  %v631_v30 = vld [vmem:[#allocation4] sm:$0xff]  ;;  %715 = vmatpush.msrb.mxu0 %v650_v35 }
 0x129   : > { %919 = vrcp.f32 %v1252_v47  ;;  %vm551_vm5 = vmor %vm549_vm4, %vm550_vm3  ;;  %v570_v13 = vand.u32 2147483648, %v1252_v47  ;;  %v568_v16 = vand.u32 2147483647, %v1252_v47  ;;  %vm564_vm8 = vweird.f32 %v1252_v47  ;;  %698 = vmatpush.msrb.mxu3 %v631_v30  ;;  %735 = vmatpush.msrb.mxu2 %v666_v36 }
 0x12a   : > { %v546_v54 = vsub.f32 1.0, %v545_v50  ;;  %716 = vmatpush.msrb.mxu0 %v649_v37 }
 0x12b   : > { %v571_v19 = vor.u32 1.1754944e-38, %v570_v13  ;;  %vm569_vm10 = vcmp.eq.f32.partialorder %v568_v16, 8.507059e+37  ;;  %736 = vmatpush.msrb.mxu2 %v665_v38  ;;  %v911_v16 = vld [vmem:[%s1292_s7] ss:$0 sm:$0xff] }
 0x12c   : > { %v547_v61 = vmul.f32 %v918_v45, %v546_v54  ;;  %717 = vmatpush.msrb.mxu0 %v648_v39 }
 0x12d   : > { %737 = vmatpush.msrb.mxu2 %v664_v40 }
 0x12e   : > { %v548_v2 = vadd.f32 %v918_v45, %v547_v61  ;;  %718 = vmatpush.msrb.mxu0 %v647_v41 }
 0x12f   : > { %v920_v0 = vpop.eup %919  ;;  %738 = vmatpush.msrb.mxu2 %v663_v42 }
 0x130   : > { %v552_v1 = vsel %vm551_vm5, %v918_v45, %v548_v2  ;;  %v560_v6 = vmul.f32 %v920_v0, %v1252_v47  ;;  %vm565_vm7 = vweird.f32 %v920_v0  ;;  %v748_v2 = vlaneseq }
 0x131   : > { %v557_v9 = vsel %vm554_vm6, %v556_v4, %v552_v1  ;;  %vm566_vm9 = vmor %vm564_vm8, %vm565_vm7 }
 0x132   : > { %v574_v10 = vmul.f32 %v557_v9, %v485_v5  ;;  %v561_v11 = vsub.f32 1.0, %v560_v6  ;;  %v749_v3 = vand.u32 127, %v748_v2 }
 0x134   : > { %612 = vmatmul.f32.vlgmr.msrb.gmra.mxu1 %v574_v10  ;;  %v562_v15 = vmul.f32 %v920_v0, %v561_v11  ;;  %vm750_vm11 = vcmp.lt.s32.totalorder %v749_v3, 96 }
 0x136   : > { %v563_v18 = vadd.f32 %v920_v0, %v562_v15 }
 0x138   : > { %v567_v21 = vsel %vm566_vm9, %v920_v0, %v563_v18  ;;  %v912_v18 = vld [vmem:[%s1293_s8] ss:$0 sm:$0xff] }
 0x139   : > { %v572_v22 = vsel %vm569_vm10, %v571_v19, %v567_v21 }
 0x13a   : > { %v575_v23 = vmul.f32 %v572_v22, %v488_v20 }
 0x13c   : > { %615 = vmatmul.f32.gmra.mxu1 %v575_v23 }
 0x1b1   : > { %v613_v44 = vpop.f32.mrf.mxu1 }
 0x1b2   : > { %v614_v45 = vadd.f32 %v909_v43, %v613_v44 }
 0x1b4   : > { %v619_v46 = vmax.f32 %v614_v45, 0.0 }
 0x1b6   : > { %699 = vmatmul.f32.vlgmr.msrb.gmra.mxu3 %v619_v46  ;;  %v623_v50 = vrot.slane %v619_v46, 1  ;;  %v627_v51 = vrot.slane %v619_v46, 2 }
 0x1b9   : > { %v616_v47 = vpop.f32.mrf.mxu1 }
 0x1ba   : > { %v617_v48 = vadd.f32 %v909_v43, %v616_v47 }
 0x1bc   : > { %v620_v49 = vmax.f32 %v617_v48, 0.0 }
 0x1be   : > { %v624_v52 = vrot.slane %v620_v49, 1  ;;  %v628_v53 = vrot.slane %v620_v49, 2 }
 0x1c0   : > { %v625_v54 = vsel %vm369_vm0, %v623_v50, %v624_v52  ;;  %v629_v55 = vsel %vm379_vm1, %v627_v51, %v628_v53 }
 0x1c1   : > { %719 = vmatmul.f32.vlgmr.msrb.gmra.mxu0 %v625_v54  ;;  %739 = vmatmul.f32.vlgmr.msrb.gmra.mxu2 %v629_v55 }
 0x239   : > { %v700_v57 = vpop.f32.mrf.mxu3 }
 0x23a   : > { %v701_v59 = vadd.f32 %v910_v56, %v700_v57 }
 0x23e   : > { %v720_v58 = vpop.f32.mrf.mxu0 }
 0x23f   : > { %v721_v60 = vadd.f32 %v720_v58, %v701_v59 }
 0x244   : > { %v740_v61 = vpop.f32.mrf.mxu2 }
 0x245   : > { %v741_v62 = vadd.f32 %v740_v61, %v721_v60 }
 0x247   : > { %v743_v63 = vmax.f32 %v741_v62, 0.0 }
 0x249   : > { %744 = vadd.xlane.f32.xlu1 %v743_v63 }
 0x2bc   : > { %v745_v0 = vpop.xlane.xlu1 %744 }
 0x2bd   : > { %v746_v4 = vmul.f32 0.010416667, %v745_v0 }
 0x2bf   : > { %v747_v5 = vsub.f32 %v743_v63, %v746_v4 }
 0x2c1   : > { %v753_v1 = vsel %vm750_vm11, %v747_v5, 0.0 }
 0x2c2   : > { %v754_v6 = vmul.f32 %v753_v1, %v753_v1 }
 0x2c4   : > { %755 = vadd.xlane.f32.xlu1 %v754_v6 }
 0x337   : > { %v756_v7 = vpop.xlane.xlu1 %755 }
 0x338   : > { %v757_v8 = vmul.f32 0.010416667, %v756_v7 }
 0x33a   : > { %v758_v9 = vadd.f32 1e-05, %v757_v8 }
 0x33c   : > { %921 = vrsqrt.f32 %v758_v9  ;;  %vm765_vm13 = vweird.f32 %v758_v9 }
 0x342   : > { %v922_v10 = vpop.eup %921 }
 0x343   : > { %v760_v11 = vmul.f32 %v922_v10, %v758_v9  ;;  %vm766_vm12 = vweird.f32 %v922_v10 }
 0x344   : > { %vm767_vm14 = vmor %vm765_vm13, %vm766_vm12 }
 0x345   : > { %v761_v12 = vmul.f32 %v922_v10, %v760_v11 }
 0x347   : > { %v762_v13 = vmul.f32 0.5, %v761_v12 }
 0x349   : > { %v763_v14 = vsub.f32 1.5, %v762_v13 }
 0x34b   : > { %v764_v15 = vmul.f32 %v922_v10, %v763_v14 }
 0x34d   : > { %v768_v17 = vsel %vm767_vm14, %v922_v10, %v764_v15 }
 0x34e   : > { %v769_v19 = vmul.f32 %v768_v17, %v753_v1 }
 0x350   : > { %v774_v20 = vmul.f32 %v911_v16, %v769_v19 }
 0x352   : > { %v779_v21 = vadd.f32 %v912_v18, %v774_v20 }
 0x354   : > { %780 = vst [vmem:[%s364_s25] sm:$0xff] %v779_v21 }
 0x355 PF: > { %s21_s30 = sadd.s32 1, %s997_s30  }
 0x356   : > { %p18_p7 = scmp.ge.s32.totalorder %s21_s30, 4  }
 0x358   :  { %20 = sbr.rel (!%p18_p7) target bundleno = 2 (0x2), region = 95 }
 0x35d   :  { %800 = vsyncpa [#allocation3], 1 }
 0x35e   :  { %802 = vsyncpa [#allocation3 + $0x1], 1 }
 0x35f   :  { %803 = vsyncpa [#allocation5], 1 }

</bundles_post_ra>
